<compile_context>
chip_gen: v6e
topology: v6e:2x2x1
jax: 0.10.0
libtpu: 0.0.40
codegen_flags: <defaults>
</compile_context>

<pallas_src>
import functools

import jax
import jax.numpy as jnp
from jax.experimental import pallas as pl
from jax.experimental.pallas import tpu as pltpu

V_THRESHOLD = 1.0  # SpikeNet LIF default; tau=1.0, v_reset=0.0 => v <- dv (memoryless)
H_PAD = 128        # lane-dense hidden width
O_PAD = 128        # lane-dense output width (unmasked 128-lane stores)


def spikenet_kernel(self_ref, neigh_ref, wl_ref, wr_ref, b_ref,
                    wpool_ref, b_pool_ref, out_ref):
    # self_ref:   [T*Mp, F]     bf16   (seed+hop1 node features, snapshots row-stacked)
    # neigh_ref:  [T*Mp, F]     bf16   (pre-reduced neighbor means, same stacking)
    # wl_ref:     [F, Hp]       bf16   (lin_l weight, H zero-padded to 128)
    # wr_ref:     [F, Hp]       bf16   (lin_r weight, H zero-padded to 128)
    # b_ref:      [1, Hp]       f32    (aggregator bias, zero-padded)
    # wpool_ref:  [T*Hp, OP]    bf16   (pooling weight.T, flattened over time, zero-padded)
    # b_pool_ref: [1, OP]       f32
    # out_ref:    [Mp, OP]      f32
    Hp = wl_ref.shape[1]
    T = wpool_ref.shape[0] // Hp
    Mp = out_ref.shape[0]

    # --- SAGE aggregator for ALL T snapshots at once (two row-stacked MXU calls) ---
    z = jnp.dot(self_ref[...], wl_ref[...], preferred_element_type=jnp.float32)
    z = z + jnp.dot(neigh_ref[...], wr_ref[...], preferred_element_type=jnp.float32)
    z = z + b_ref[...]                                          # [T*Mp, Hp] f32

    # --- LIF neuron: tau=1 -> v = z ; spike = heaviside(v - v_threshold) ---
    spike = (z >= V_THRESHOLD).astype(jnp.bfloat16)             # exact 0/1 -> bf16 lossless
    # padded lanes: z = 0 < threshold -> spike = 0, and padded wpool rows are 0 anyway.
    # TODO(synk): nn.Dropout(0.7) is identity in eval mode; training-mode dropout not modeled.

    # --- time-concatenate spikes on the LANE axis: [Mp, T*Hp] ---
    # each per-t block is a tile-aligned [Mp, 128] slab (Mp % 16 == 0), so the
    # row slice + lane concat is vreg placement, not an XLU relayout.
    spike_lane = jnp.concatenate(
        [spike[t * Mp:(t + 1) * Mp, :] for t in range(T)], axis=-1)

    # --- pooling Linear(T*H, O): ONE fused contraction, lane-dense output ---
    out_ref[...] = (jnp.dot(spike_lane, wpool_ref[...],
                            preferred_element_type=jnp.float32)
                    + b_pool_ref[...])


def prepare_spikenet_params(wl, wr, b_agg, wpool, b_pool):
    """One-time (init-time) parameter prep: pad H->128, O->128, cast to bf16,
    flatten pooling weights over time.  Keep the result cached across calls."""
    F, H = wl.shape
    T, _, O = wpool.shape
    wl_p = jnp.zeros((F, H_PAD), jnp.bfloat16).at[:, :H].set(wl.astype(jnp.bfloat16))
    wr_p = jnp.zeros((F, H_PAD), jnp.bfloat16).at[:, :H].set(wr.astype(jnp.bfloat16))
    b_p = jnp.zeros((1, H_PAD), jnp.float32).at[:, :H].set(b_agg.astype(jnp.float32))
    wpool_flat = jnp.zeros((T * H_PAD, O_PAD), jnp.bfloat16)
    for t in range(T):
        wpool_flat = wpool_flat.at[t * H_PAD:t * H_PAD + H, :O].set(
            wpool[t].astype(jnp.bfloat16))
    b_pool_p = jnp.zeros((1, O_PAD), jnp.float32).at[:, :O].set(
        b_pool.astype(jnp.float32))
    return (wl_p, wr_p, b_p, wpool_flat, b_pool_p)


@functools.partial(jax.jit, static_argnames=("out_features",))
def spikenet_forward(self_cat, nbr1, nbr2, params, out_features):
    """self_cat: [T, M, F]; nbr1: [T, n, s0, F]; nbr2: [T, n*s0, s1, F];
       params: output of prepare_spikenet_params (already padded / bf16)."""
    wl_p, wr_p, b_p, wpool_flat, b_pool_p = params
    T, M, F = self_cat.shape
    Hp = wl_p.shape[1]
    OP = wpool_flat.shape[1]

    # --- pre-reduce neighbor means outside the kernel (SAGE aggr='mean') ---
    nm1 = jnp.mean(nbr1, axis=2)                                # [T, n,    F]
    nm2 = jnp.mean(nbr2, axis=2)                                # [T, n*s0, F]
    neigh_mean = jnp.concatenate([nm1, nm2], axis=1)            # [T, M,    F]

    # --- bf16 BEFORE staging; self / neigh stay separate (no f32 2F concat) ---
    self_bf = self_cat.astype(jnp.bfloat16)
    neigh_bf = neigh_mean.astype(jnp.bfloat16)

    # --- pad M to a multiple of 16 so per-t row slices stay (16,128)-tile aligned ---
    Mp = ((M + 15) // 16) * 16
    if Mp != M:
        pad = ((0, 0), (0, Mp - M), (0, 0))
        self_bf = jnp.pad(self_bf, pad)
        neigh_bf = jnp.pad(neigh_bf, pad)
    self_flat = self_bf.reshape(T * Mp, F)
    neigh_flat = neigh_bf.reshape(T * Mp, F)

    flops = 2 * (T * Mp) * F * Hp * 2 + 2 * Mp * (T * Hp) * OP
    bytes_accessed = (
        2 * (self_flat.size + neigh_flat.size + wl_p.size + wr_p.size + wpool_flat.size)
        + 4 * (b_p.size + b_pool_p.size + Mp * OP))

    # Single invocation: everything (a few tens of KB) fits VMEM on all
    # generations, so no grid is needed.  (At real graph scale: add a leading
    # "parallel" M grid axis -- v7x has 2 TCs -- keep weight index_maps constant,
    # and budget the M tile against v5e 16 MiB scoped / v7x 32 MiB scoped VMEM.)
    out_pad = pl.pallas_call(
        spikenet_kernel,
        out_shape=jax.ShapeDtypeStruct((Mp, OP), jnp.float32),
        in_specs=[pl.BlockSpec(memory_space=pltpu.MemorySpace.VMEM)] * 7,
        out_specs=pl.BlockSpec(memory_space=pltpu.MemorySpace.VMEM),
        cost_estimate=pl.CostEstimate(
            flops=flops, transcendentals=0, bytes_accessed=bytes_accessed),
    )(self_flat, neigh_flat, wl_p, wr_p, b_p, wpool_flat, b_pool_p)

    return out_pad[:M, :out_features]


if __name__ == "__main__":
    # ---- small config consistent with SpikeNet defaults ----
    T = 3          # len(data): number of graph snapshots
    N = 64         # total nodes in each snapshot
    F = 16         # in_features
    H = 32         # hids[0]
    O = 8          # out_features
    n = 8          # number of seed nodes in the batch
    sizes = [5, 2]
    s0, s1 = sizes

    key = jax.random.PRNGKey(0)
    ks = jax.random.split(key, 10)

    # snapshot node features and seed nodes
    x = jax.random.normal(ks[0], (T, N, F), jnp.float32)          # [T, N, F]
    nodes = jax.random.randint(ks[1], (n,), 0, N)                  # [n]

    # neighbor sampling (Sampler / Sampler_t over adj / adj_evolve):
    # replaced by deterministic synthetic random neighbor indices (glue).
    nbr1_idx = jax.random.randint(ks[2], (T, n * s0), 0, N)        # hop-1: s0 per root
    nbr2_idx = jax.random.randint(ks[3], (T, n * s0 * s1), 0, N)   # hop-2: s1 per hop-1 node

    # gathers (glue)
    h0 = x[jnp.arange(T)[:, None], nodes[None, :]]                 # [T, n,        F]
    h1 = jnp.take_along_axis(x, nbr1_idx[:, :, None], axis=1)      # [T, n*s0,     F]
    h2 = jnp.take_along_axis(x, nbr2_idx[:, :, None], axis=1)      # [T, n*s0*s1,  F]

    self_cat = jnp.concatenate([h0, h1], axis=1)                   # [T, M, F], M = n*(1+s0)
    nbr1 = h1.reshape(T, n, s0, F)                                 # neighbors of h0
    nbr2 = h2.reshape(T, n * s0, s1, F)                            # neighbors of h1

    # ---- deterministic parameter init (synthetic; no checkpoint load) ----
    wl = jax.random.normal(ks[4], (F, H), jnp.float32) / jnp.sqrt(F)
    wr = jax.random.normal(ks[5], (F, H), jnp.float32) / jnp.sqrt(F)
    bl = 0.1 * jax.random.normal(ks[6], (H,), jnp.float32)
    br = 0.1 * jax.random.normal(ks[7], (H,), jnp.float32)
    b_agg = (bl + br).reshape(1, H)                                # lin_l.bias + lin_r.bias

    wpool = (jax.random.normal(ks[8], (T, H, O), jnp.float32)
             / jnp.sqrt(T * H))                                    # Linear(T*H, O) weight.T
    b_pool = 0.1 * jax.random.normal(ks[9], (1, O), jnp.float32)

    # one-time parameter prep (hoisted out of the per-call path)
    params = prepare_spikenet_params(wl, wr, b_agg, wpool, b_pool)
    params = jax.tree_util.tree_map(jax.block_until_ready, params)

    out = spikenet_forward(self_cat, nbr1, nbr2, params, out_features=O)
    jax.block_until_ready(out)
    assert out.shape == (n * (1 + s0), O)
    assert bool(jnp.all(jnp.isfinite(out)))
    print("KERNEL_OK")
</pallas_src>

<mosaic_0001>
module attributes {stable_mosaic.version = 11 : i64} {
  func.func @spikenet_kernel(%arg0: memref<144x16xbf16, #tpu.memory_space<vmem>>, %arg1: memref<144x16xbf16, #tpu.memory_space<vmem>>, %arg2: memref<16x128xbf16, #tpu.memory_space<vmem>>, %arg3: memref<16x128xbf16, #tpu.memory_space<vmem>>, %arg4: memref<1x128xf32, #tpu.memory_space<vmem>>, %arg5: memref<384x128xbf16, #tpu.memory_space<vmem>>, %arg6: memref<1x128xf32, #tpu.memory_space<vmem>>, %arg7: memref<48x128xf32, #tpu.memory_space<vmem>>) attributes {dimension_semantics = [], scalar_prefetch = 0 : i64, scratch_operands = 0 : i64, tpu.core_type = #tpu.core_type<tc>} {
    %c0 = arith.constant 0 : index
    %c0_0 = arith.constant 0 : index
    %0 = vector.load %arg0[%c0, %c0_0] : memref<144x16xbf16, #tpu.memory_space<vmem>>, vector<144x16xbf16>
    %c0_1 = arith.constant 0 : index
    %c0_2 = arith.constant 0 : index
    %1 = vector.load %arg2[%c0_1, %c0_2] : memref<16x128xbf16, #tpu.memory_space<vmem>>, vector<16x128xbf16>
    %cst = arith.constant dense<0.000000e+00> : vector<144x128xf32>
    %2 = tpu.matmul %0, %1, %cst {dimension_numbers = #tpu.dot_dimension_numbers<[1], [0], [0], [1], [0, 0, 1, 1], [], []>} : vector<144x16xbf16>, vector<16x128xbf16>, vector<144x128xf32> -> vector<144x128xf32>
    %c0_3 = arith.constant 0 : index
    %c0_4 = arith.constant 0 : index
    %3 = vector.load %arg1[%c0_3, %c0_4] : memref<144x16xbf16, #tpu.memory_space<vmem>>, vector<144x16xbf16>
    %c0_5 = arith.constant 0 : index
    %c0_6 = arith.constant 0 : index
    %4 = vector.load %arg3[%c0_5, %c0_6] : memref<16x128xbf16, #tpu.memory_space<vmem>>, vector<16x128xbf16>
    %cst_7 = arith.constant dense<0.000000e+00> : vector<144x128xf32>
    %5 = tpu.matmul %3, %4, %cst_7 {dimension_numbers = #tpu.dot_dimension_numbers<[1], [0], [0], [1], [0, 0, 1, 1], [], []>} : vector<144x16xbf16>, vector<16x128xbf16>, vector<144x128xf32> -> vector<144x128xf32>
    %6 = arith.addf %2, %5 : vector<144x128xf32>
    %c0_8 = arith.constant 0 : index
    %c0_9 = arith.constant 0 : index
    %7 = vector.load %arg4[%c0_8, %c0_9] : memref<1x128xf32, #tpu.memory_space<vmem>>, vector<1x128xf32>
    %8 = vector.broadcast %7 : vector<1x128xf32> to vector<144x128xf32>
    %9 = arith.addf %6, %8 : vector<144x128xf32>
    %cst_10 = arith.constant 1.000000e+00 : f32
    %10 = vector.broadcast %cst_10 : f32 to vector<144x128xf32>
    %11 = arith.cmpf oge, %9, %10 : vector<144x128xf32>
    %12 = arith.extui %11 : vector<144x128xi1> to vector<144x128xi32>
    %13 = arith.sitofp %12 : vector<144x128xi32> to vector<144x128xf32>
    %14 = arith.truncf %13 : vector<144x128xf32> to vector<144x128xbf16>
    %15 = vector.extract_strided_slice %14 {offsets = [0, 0], sizes = [48, 128], strides = [1, 1]} : vector<144x128xbf16> to vector<48x128xbf16>
    %16 = vector.extract_strided_slice %14 {offsets = [48, 0], sizes = [48, 128], strides = [1, 1]} : vector<144x128xbf16> to vector<48x128xbf16>
    %17 = vector.extract_strided_slice %14 {offsets = [96, 0], sizes = [48, 128], strides = [1, 1]} : vector<144x128xbf16> to vector<48x128xbf16>
    %18 = tpu.concatenate %15, %16, %17 in 1 : vector<48x128xbf16>, vector<48x128xbf16>, vector<48x128xbf16> -> vector<48x384xbf16>
    %c0_11 = arith.constant 0 : index
    %c0_12 = arith.constant 0 : index
    %19 = vector.load %arg5[%c0_11, %c0_12] : memref<384x128xbf16, #tpu.memory_space<vmem>>, vector<384x128xbf16>
    %cst_13 = arith.constant dense<0.000000e+00> : vector<48x128xf32>
    %20 = tpu.matmul %18, %19, %cst_13 {dimension_numbers = #tpu.dot_dimension_numbers<[1], [0], [0], [1], [0, 0, 1, 1], [], []>} : vector<48x384xbf16>, vector<384x128xbf16>, vector<48x128xf32> -> vector<48x128xf32>
    %c0_14 = arith.constant 0 : index
    %c0_15 = arith.constant 0 : index
    %21 = vector.load %arg6[%c0_14, %c0_15] : memref<1x128xf32, #tpu.memory_space<vmem>>, vector<1x128xf32>
    %22 = vector.broadcast %21 : vector<1x128xf32> to vector<48x128xf32>
    %23 = arith.addf %20, %22 : vector<48x128xf32>
    %c0_16 = arith.constant 0 : index
    %c0_17 = arith.constant 0 : index
    %24 = vector.load %arg7[%c0_16, %c0_17] : memref<48x128xf32, #tpu.memory_space<vmem>>, vector<48x128xf32>
    tpu.vector_store %arg7[%c0_16, %c0_17], %23 {strides = array<i32>} : memref<48x128xf32, #tpu.memory_space<vmem>>, vector<48x128xf32>,
    return
  }
}

</mosaic_0001>

<bundles_post_ra>
// kernel: spikenet_forward.1
= control target key start
LH: loop header
LB: loop body
LE: loop exit
PB: predicated region body
PF: predicated region fallthrough
CT: control target
= control target key end

     0   :  { %v1161_v0 = vmov 0.0   ;;  %vm1162_vm0 = vmmov 0   ;;  %vm118_vm1 = vcmask 130048   ;;  %s1459_s3 = inlined_call_operand.vmem [shape: bf16[16,128], index: 3, kind: input, shape index: {}]   ;;  %s1460_s2 = inlined_call_operand.vmem [shape: bf16[16,128], index: 2, kind: input, shape index: {}]   ;;  %s1461_s1 = inlined_call_operand.vmem [shape: bf16[144,16], index: 1, kind: input, shape index: {}]   ;;  %s1462_s0 = inlined_call_operand.vmem [shape: bf16[144,16], index: 0, kind: input, shape index: {}]   ;;  %s1463_s5 = inlined_call_operand.vmem [shape: bf16[384,128], index: 5, kind: input, shape index: {}]   ;;  %s1464_s4 = inlined_call_operand.vmem [shape: f32[1,128], index: 4, kind: input, shape index: {}]   ;;  %s1465_s6 = inlined_call_operand.vmem [shape: f32[1,128], index: 6, kind: input, shape index: {}]   ;;  %s1466_s7 = inlined_call_operand.vmem [shape: f32[48,128], index: 7, kind: output, shape index: {}]  }
   0x1   :  { %1010 = vmatprep.subr.bf16.mxu0 %v1161_v0  ;;  %1048 = vmatprep.subr.bf16.mxu1 %v1161_v0  ;;  %v1117_v1 = vld [vmem:[%s1459_s3] sm:$0xff]   ;;  %v1121_v5 = vld [vmem:[%s1461_s1 + $0x8] sm:$0xff]   ;;  %v1123_v7 = vld [vmem:[%s1461_s1 + $0x10] sm:$0xff]  }
   0x2   :  { %v1118_v2 = vld [vmem:[%s1460_s2] sm:$0xff]   ;;  %1012 = vmatprep.mubr.msk.bf16.mxu0 %vm1162_vm0, %v1161_v0  ;;  %1050 = vmatprep.mubr.msk.bf16.mxu1 %vm1162_vm0, %v1161_v0  ;;  %v1122_v6 = vld [vmem:[%s1462_s0 + $0x8] sm:$0xff]   ;;  %v1124_v8 = vld [vmem:[%s1462_s0 + $0x10] sm:$0xff]  }
   0x3   :  { %1011 = vmatpush3.bf16.msra.mxu0 %v1117_v1  ;;  %v1119_v3 = vld [vmem:[%s1461_s1] sm:$0xff]   ;;  %1049 = vmatpush3.bf16.msra.mxu1 %v1118_v2  ;;  %v1137_v9 = vld [vmem:[%s1463_s5 + $0x78] sm:$0xff]   ;;  %v1140_v13 = vld [vmem:[%s1463_s5 + $0x70] sm:$0xff]  }
   0x4   :  { %v1120_v4 = vld [vmem:[%s1462_s0] sm:$0xff]   ;;  %1086 = vmatprep.subr.bf16.mxu1 %v1161_v0  ;;  %v1138_v10 = vld [vmem:[%s1463_s5 + $0x38] sm:$0xff]   ;;  %965 = vmatprep.subr.bf16.mxu0 %v1137_v9  ;;  %v1141_v15 = vld [vmem:[%s1463_s5 + $0x30] sm:$0xff]  }
   0x5   :  { %v1139_v11 = vld [vmem:[%s1463_s5 + $0xb8] sm:$0xff]   ;;  %v1142_v16 = vld [vmem:[%s1463_s5 + $0xb0] sm:$0xff]   ;;  %v1143_v17 = vld [vmem:[%s1463_s5 + $0x68] sm:$0xff]  }
   0x6   :  { %1013 = vmatmul.mubr.msk.bf16.vlgmr.msra.gmra.mxu0 %vm118_vm1, %v1119_v3  ;;  %1051 = vmatmul.mubr.msk.bf16.vlgmr.msra.gmra.mxu1 %vm118_vm1, %v1120_v4  ;;  %v1125_v12 = vld [vmem:[%s1461_s1 + $0x18] sm:$0xff]   ;;  %v1144_v18 = vld [vmem:[%s1463_s5 + $0x28] sm:$0xff]   ;;  %v1127_v19 = vld [vmem:[%s1461_s1 + $0x20] sm:$0xff]  }
   0x7   :  { %1016 = vmatprep.mubr.msk.bf16.mxu0 %vm1162_vm0, %v1161_v0  ;;  %1054 = vmatprep.mubr.msk.bf16.mxu1 %vm1162_vm0, %v1161_v0  ;;  %v1126_v14 = vld [vmem:[%s1462_s0 + $0x18] sm:$0xff]   ;;  %v1128_v20 = vld [vmem:[%s1462_s0 + $0x20] sm:$0xff]   ;;  %v1129_v21 = vld [vmem:[%s1461_s1 + $0x28] sm:$0xff]  }
   0x8   :  { %966 = vmatpush3.bf16.msra.mxu0 %v1138_v10  ;;  %1087 = vmatpush3.bf16.msra.mxu1 %v1139_v11  ;;  %v1130_v22 = vld [vmem:[%s1462_s0 + $0x28] sm:$0xff]   ;;  %v1131_v23 = vld [vmem:[%s1461_s1 + $0x30] sm:$0xff]   ;;  %v1133_v25 = vld [vmem:[%s1461_s1 + $0x38] sm:$0xff]  }
   0x9   :  { %967 = vmatprep.subr.bf16.mxu0 %v1140_v13  ;;  %1088 = vmatprep.subr.bf16.mxu1 %v1161_v0  ;;  %v1132_v24 = vld [vmem:[%s1462_s0 + $0x30] sm:$0xff]   ;;  %v1134_v26 = vld [vmem:[%s1462_s0 + $0x38] sm:$0xff]   ;;  %v1135_v27 = vld [vmem:[%s1461_s1 + $0x40] sm:$0xff]  }
   0xa   :  { %v1136_v28 = vld [vmem:[%s1462_s0 + $0x40] sm:$0xff]   ;;  %v1145_v29 = vld [vmem:[%s1463_s5 + $0xa8] sm:$0xff]   ;;  %v1149_v33 = vld [vmem:[%s1463_s5 + $0x58] sm:$0xff]  }
   0xb   :  { %v1146_v30 = vld [vmem:[%s1463_s5 + $0x60] sm:$0xff]   ;;  %v1150_v34 = vld [vmem:[%s1463_s5 + $0x18] sm:$0xff]   ;;  %v1152_v35 = vld [vmem:[%s1463_s5 + $0x50] sm:$0xff]  }
   0xc   :  { %968 = vmatpush3.bf16.msra.mxu0 %v1141_v15  ;;  %1089 = vmatpush3.bf16.msra.mxu1 %v1142_v16  ;;  %v1147_v31 = vld [vmem:[%s1463_s5 + $0x20] sm:$0xff]   ;;  %v1153_v36 = vld [vmem:[%s1463_s5 + $0x10] sm:$0xff]   ;;  %v1151_v37 = vld [vmem:[%s1463_s5 + $0x98] sm:$0xff]  }
   0xd   :  { %969 = vmatprep.subr.bf16.mxu0 %v1143_v17  ;;  %1090 = vmatprep.subr.bf16.mxu1 %v1161_v0  ;;  %v1148_v32 = vld [vmem:[%s1463_s5 + $0xa0] sm:$0xff]   ;;  %v1154_v38 = vld [vmem:[%s1463_s5 + $0x48] sm:$0xff]   ;;  %v1157_v42 = vld [vmem:[%s1463_s5 + $0x90] sm:$0xff]  }
   0xe   :  { %1017 = vmatmul.mubr.msk.bf16.gmra.mxu0 %vm118_vm1, %v1121_v5  ;;  %1055 = vmatmul.mubr.msk.bf16.gmra.mxu1 %vm118_vm1, %v1122_v6  ;;  %v1155_v39 = vld [vmem:[%s1463_s5 + $0x8] sm:$0xff]   ;;  %v1156_v40 = vld [vmem:[%s1463_s5 + $0x40] sm:$0xff]  }
   0xf   :  { %1020 = vmatprep.mubr.msk.bf16.mxu0 %vm1162_vm0, %v1161_v0  ;;  %1058 = vmatprep.mubr.msk.bf16.mxu1 %vm1162_vm0, %v1161_v0  ;;  %v1158_v41 = vld [vmem:[%s1463_s5] sm:$0xff]   ;;  %v1159_v43 = vld [vmem:[%s1463_s5 + $0x88] sm:$0xff]  }
  0x10   :  { %970 = vmatpush3.bf16.msra.mxu0 %v1144_v18  ;;  %1091 = vmatpush3.bf16.msra.mxu1 %v1145_v29  ;;  %v1160_v44 = vld [vmem:[%s1463_s5 + $0x80] sm:$0xff]  }
  0x11   :  { %971 = vmatprep.subr.bf16.mxu0 %v1146_v30  ;;  %1092 = vmatprep.subr.bf16.mxu1 %v1161_v0  ;;  %v1405_v13 = vld [vmem:[%s1464_s4] ss:$0 sm:$0xff]  ;;  %v1163_v30 = vmov 1.0|1.0  }
  0x14   :  { %972 = vmatpush3.bf16.msra.mxu0 %v1147_v31  ;;  %1093 = vmatpush3.bf16.msra.mxu1 %v1148_v32 }
  0x15   :  { %973 = vmatprep.subr.bf16.mxu0 %v1149_v33  ;;  %1094 = vmatprep.subr.bf16.mxu1 %v1161_v0 }
  0x16   :  { %1021 = vmatmul.mubr.msk.bf16.gmra.mxu0 %vm118_vm1, %v1123_v7  ;;  %1059 = vmatmul.mubr.msk.bf16.gmra.mxu1 %vm118_vm1, %v1124_v8 }
  0x17   :  { %1024 = vmatprep.mubr.msk.bf16.mxu0 %vm1162_vm0, %v1161_v0  ;;  %1062 = vmatprep.mubr.msk.bf16.mxu1 %vm1162_vm0, %v1161_v0 }
  0x18   :  { %974 = vmatpush3.bf16.msra.mxu0 %v1150_v34  ;;  %1095 = vmatpush3.bf16.msra.mxu1 %v1151_v37 }
  0x19   :  { %975 = vmatprep.subr.bf16.mxu0 %v1152_v35  ;;  %1096 = vmatprep.subr.bf16.mxu1 %v1161_v0 }
  0x1c   :  { %976 = vmatpush3.bf16.msra.mxu0 %v1153_v36  ;;  %1097 = vmatpush3.bf16.msra.mxu1 %v1157_v42 }
  0x1d   :  { %977 = vmatprep.subr.bf16.mxu0 %v1154_v38  ;;  %1098 = vmatprep.subr.bf16.mxu1 %v1161_v0 }
  0x1e   :  { %1025 = vmatmul.mubr.msk.bf16.gmra.mxu0 %vm118_vm1, %v1125_v12  ;;  %1063 = vmatmul.mubr.msk.bf16.gmra.mxu1 %vm118_vm1, %v1126_v14 }
  0x1f   :  { %1028 = vmatprep.mubr.msk.bf16.mxu0 %vm1162_vm0, %v1161_v0  ;;  %1066 = vmatprep.mubr.msk.bf16.mxu1 %vm1162_vm0, %v1161_v0 }
  0x20   :  { %978 = vmatpush3.bf16.msra.mxu0 %v1155_v39  ;;  %1099 = vmatpush3.bf16.msra.mxu1 %v1159_v43 }
  0x21   :  { %979 = vmatprep.subr.bf16.mxu0 %v1156_v40  ;;  %1100 = vmatprep.subr.bf16.mxu1 %v1161_v0 }
  0x24   :  { %980 = vmatpush3.bf16.msra.mxu0 %v1158_v41  ;;  %1101 = vmatpush3.bf16.msra.mxu1 %v1160_v44 }
  0x26   :  { %1029 = vmatmul.mubr.msk.bf16.gmra.mxu0 %vm118_vm1, %v1127_v19  ;;  %1067 = vmatmul.mubr.msk.bf16.gmra.mxu1 %vm118_vm1, %v1128_v20 }
  0x27   :  { %1032 = vmatprep.mubr.msk.bf16.mxu0 %vm1162_vm0, %v1161_v0  ;;  %1070 = vmatprep.mubr.msk.bf16.mxu1 %vm1162_vm0, %v1161_v0 }
  0x2e   :  { %1033 = vmatmul.mubr.msk.bf16.gmra.mxu0 %vm118_vm1, %v1129_v21  ;;  %1071 = vmatmul.mubr.msk.bf16.gmra.mxu1 %vm118_vm1, %v1130_v22 }
  0x2f   :  { %1036 = vmatprep.mubr.msk.bf16.mxu0 %vm1162_vm0, %v1161_v0  ;;  %1074 = vmatprep.mubr.msk.bf16.mxu1 %vm1162_vm0, %v1161_v0 }
  0x36   :  { %1037 = vmatmul.mubr.msk.bf16.gmra.mxu0 %vm118_vm1, %v1131_v23  ;;  %1075 = vmatmul.mubr.msk.bf16.gmra.mxu1 %vm118_vm1, %v1132_v24 }
  0x37   :  { %1040 = vmatprep.mubr.msk.bf16.mxu0 %vm1162_vm0, %v1161_v0  ;;  %1078 = vmatprep.mubr.msk.bf16.mxu1 %vm1162_vm0, %v1161_v0 }
  0x3e   :  { %1041 = vmatmul.mubr.msk.bf16.gmra.mxu0 %vm118_vm1, %v1133_v25  ;;  %1079 = vmatmul.mubr.msk.bf16.gmra.mxu1 %vm118_vm1, %v1134_v26 }
  0x3f   :  { %1044 = vmatprep.mubr.msk.bf16.mxu0 %vm1162_vm0, %v1161_v0  ;;  %1082 = vmatprep.mubr.msk.bf16.mxu1 %vm1162_vm0, %v1161_v0 }
  0x46   :  { %1045 = vmatmul.mubr.msk.bf16.gmra.mxu0 %vm118_vm1, %v1135_v27  ;;  %1083 = vmatmul.mubr.msk.bf16.gmra.mxu1 %vm118_vm1, %v1136_v28 }
  0x47   :  { %1102 = vmatprep.mubr.msk.bf16.mxu1 %vm1162_vm0, %v1161_v0 }
  0xc6   :  { %v180_v45 = vpop.f32.mrf.mxu0  ;;  %v363_v46 = vpop.f32.mrf.mxu1 }
  0xc7   :  { %v364_v11 = vadd.f32 %v363_v46, %v180_v45 }
  0xc8   :  { %v1014_v47 = vpop.f32.mrf.mxu0  ;;  %v1052_v48 = vpop.f32.mrf.mxu1 }
  0xc9   :  { %v441_v20 = vadd.f32 %v1405_v13, %v364_v11 }
  0xca   :  { %v183_v49 = vpop.f32.mrf.mxu0  ;;  %v366_v50 = vpop.f32.mrf.mxu1 }
  0xcb   :  { %v367_v7 = vadd.f32 %v366_v50, %v183_v49  ;;  %vm459_vm5 = vcmp.ge.f32.partialorder %v441_v20, 1.0 }
  0xcc   :  { %v1015_v51 = vpop.f32.mrf.mxu0  ;;  %v1053_v52 = vpop.f32.mrf.mxu1 }
  0xcd   :  { %v442_v15 = vadd.f32 %v1405_v13, %v367_v7 }
  0xce   :  { %v188_v53 = vpop.f32.mrf.mxu0  ;;  %v371_v54 = vpop.f32.mrf.mxu1 }
  0xcf   :  { %vm460_vm2 = vcmp.ge.f32.partialorder %v442_v15, 1.0  ;;  %v372_v28 = vadd.f32 %v371_v54, %v188_v53 }
  0xd0   :  { %v1018_v55 = vpop.f32.mrf.mxu0  ;;  %v1056_v56 = vpop.f32.mrf.mxu1  ;;  %vm929_vm7 = vmpackc.low %vm460_vm2, %vm459_vm5 }
  0xd1   :  { %v443_v37 = vadd.f32 %v1405_v13, %v372_v28 }
  0xd2   :  { %v191_v57 = vpop.f32.mrf.mxu0  ;;  %v374_v58 = vpop.f32.mrf.mxu1 }
  0xd3   :  { %v375_v24 = vadd.f32 %v374_v58, %v191_v57  ;;  %vm461_vm11 = vcmp.ge.f32.partialorder %v443_v37, 1.0 }
  0xd4   :  { %v1019_v59 = vpop.f32.mrf.mxu0  ;;  %v1057_v60 = vpop.f32.mrf.mxu1 }
  0xd5   :  { %v444_v32 = vadd.f32 %v1405_v13, %v375_v24 }
  0xd6   :  { %v196_v61 = vpop.f32.mrf.mxu0  ;;  %v379_v62 = vpop.f32.mrf.mxu1 }
  0xd7   :  { %vm462_vm8 = vcmp.ge.f32.partialorder %v444_v32, 1.0  ;;  %v380_v45 = vadd.f32 %v379_v62, %v196_v61 }
  0xd8   :  { %v1022_v63 = vpop.f32.mrf.mxu0  ;;  %v1060_v1 = vpop.f32.mrf.mxu1  ;;  %vm933_vm13 = vmpackc.low %vm462_vm8, %vm461_vm11 }
  0xd9   :  { %v445_v53 = vadd.f32 %v1405_v13, %v380_v45 }
  0xda   :  { %v199_v2 = vpop.f32.mrf.mxu0  ;;  %v382_v3 = vpop.f32.mrf.mxu1 }
  0xdb   :  { %v383_v41 = vadd.f32 %v382_v3, %v199_v2  ;;  %vm463_vm2 = vcmp.ge.f32.partialorder %v445_v53, 1.0 }
  0xdc   :  { %v1023_v4 = vpop.f32.mrf.mxu0  ;;  %v1061_v5 = vpop.f32.mrf.mxu1 }
  0xdd   :  { %v446_v48 = vadd.f32 %v1405_v13, %v383_v41 }
  0xde   :  { %v204_v6 = vpop.f32.mrf.mxu0  ;;  %v387_v8 = vpop.f32.mrf.mxu1 }
  0xdf   :  { %v388_v9 = vadd.f32 %v387_v8, %v204_v6  ;;  %vm464_vm14 = vcmp.ge.f32.partialorder %v446_v48, 1.0 }
  0xe0   :  { %v1026_v10 = vpop.f32.mrf.mxu0  ;;  %v1064_v12 = vpop.f32.mrf.mxu1 }
  0xe1   :  { %v447_v17 = vadd.f32 %v1405_v13, %v388_v9 }
  0xe2   :  { %v207_v14 = vpop.f32.mrf.mxu0  ;;  %v390_v16 = vpop.f32.mrf.mxu1 }
  0xe3   :  { %v391_v18 = vadd.f32 %v390_v16, %v207_v14  ;;  %vm465_vm3 = vcmp.ge.f32.partialorder %v447_v17, 1.0 }
  0xe4   :  { %v1027_v19 = vpop.f32.mrf.mxu0  ;;  %v1065_v21 = vpop.f32.mrf.mxu1 }
  0xe5   :  { %v448_v22 = vadd.f32 %v1405_v13, %v391_v18 }
  0xe6   :  { %v212_v23 = vpop.f32.mrf.mxu0  ;;  %v395_v25 = vpop.f32.mrf.mxu1 }
  0xe7   :  { %vm466_vm4 = vcmp.ge.f32.partialorder %v448_v22, 1.0  ;;  %v396_v26 = vadd.f32 %v395_v25, %v212_v23 }
  0xe8   :  { %v1030_v27 = vpop.f32.mrf.mxu0  ;;  %v1068_v29 = vpop.f32.mrf.mxu1  ;;  %vm927_vm6 = vmpackc.low %vm466_vm4, %vm465_vm3 }
  0xe9   :  { %928 = vmatprep.mubr.msk.bf16.mxu0 %vm927_vm6, %v1163_v30  ;;  %v449_v34 = vadd.f32 %v1405_v13, %v396_v26  ;;  %vm937_vm4 = vmpackc.low %vm464_vm14, %vm463_vm2 }
  0xea   :  { %v215_v31 = vpop.f32.mrf.mxu0  ;;  %v398_v33 = vpop.f32.mrf.mxu1  ;;  %930 = vmatmul.mubr.msk.bf16.vlgmr.msra.gmra.mxu0 %vm929_vm7, %v1163_v30 }
  0xeb   :  { %v399_v35 = vadd.f32 %v398_v33, %v215_v31  ;;  %vm467_vm9 = vcmp.ge.f32.partialorder %v449_v34, 1.0 }
  0xec   :  { %v1031_v36 = vpop.f32.mrf.mxu0  ;;  %v1069_v38 = vpop.f32.mrf.mxu1 }
  0xed   :  { %v450_v39 = vadd.f32 %v1405_v13, %v399_v35 }
  0xee   :  { %v220_v40 = vpop.f32.mrf.mxu0  ;;  %v403_v42 = vpop.f32.mrf.mxu1 }
  0xef   :  { %vm468_vm10 = vcmp.ge.f32.partialorder %v450_v39, 1.0  ;;  %v404_v43 = vadd.f32 %v403_v42, %v220_v40  ;;  %v902_v39 = vld [vmem:[%s1465_s6] ss:$0 sm:$0xff] }
  0xf0   :  { %v1034_v44 = vpop.f32.mrf.mxu0  ;;  %v1072_v46 = vpop.f32.mrf.mxu1  ;;  %vm931_vm12 = vmpackc.low %vm468_vm10, %vm467_vm9 }
  0xf1   :  { %932 = vmatprep.mubr.msk.bf16.mxu0 %vm931_vm12, %v1163_v30  ;;  %v451_v50 = vadd.f32 %v1405_v13, %v404_v43 }
  0xf2   :  { %v223_v47 = vpop.f32.mrf.mxu0  ;;  %v406_v49 = vpop.f32.mrf.mxu1  ;;  %934 = vmatmul.mubr.msk.bf16.gmra.mxu0 %vm933_vm13, %v1163_v30 }
  0xf3   :  { %v407_v51 = vadd.f32 %v406_v49, %v223_v47  ;;  %vm469_vm15 = vcmp.ge.f32.partialorder %v451_v50, 1.0 }
  0xf4   :  { %v1035_v52 = vpop.f32.mrf.mxu0  ;;  %v1073_v54 = vpop.f32.mrf.mxu1 }
  0xf5   :  { %v452_v55 = vadd.f32 %v1405_v13, %v407_v51 }
  0xf6   :  { %v228_v56 = vpop.f32.mrf.mxu0  ;;  %v411_v57 = vpop.f32.mrf.mxu1 }
  0xf7   :  { %vm470_vm1 = vcmp.ge.f32.partialorder %v452_v55, 1.0  ;;  %v412_v58 = vadd.f32 %v411_v57, %v228_v56 }
  0xf8   :  { %v1038_v59 = vpop.f32.mrf.mxu0  ;;  %v1076_v60 = vpop.f32.mrf.mxu1  ;;  %vm935_vm3 = vmpackc.low %vm470_vm1, %vm469_vm15 }
  0xf9   :  { %936 = vmatprep.mubr.msk.bf16.mxu0 %vm935_vm3, %v1163_v30  ;;  %v453_v63 = vadd.f32 %v1405_v13, %v412_v58 }
  0xfa   :  { %v231_v61 = vpop.f32.mrf.mxu0  ;;  %v414_v62 = vpop.f32.mrf.mxu1  ;;  %938 = vmatmul.mubr.msk.bf16.gmra.mxu0 %vm937_vm4, %v1163_v30 }
  0xfb   :  { %v415_v1 = vadd.f32 %v414_v62, %v231_v61  ;;  %vm471_vm5 = vcmp.ge.f32.partialorder %v453_v63, 1.0 }
  0xfc   :  { %v1039_v2 = vpop.f32.mrf.mxu0  ;;  %v1077_v3 = vpop.f32.mrf.mxu1 }
  0xfd   :  { %v454_v4 = vadd.f32 %v1405_v13, %v415_v1 }
  0xfe   :  { %v236_v5 = vpop.f32.mrf.mxu0  ;;  %v419_v6 = vpop.f32.mrf.mxu1 }
  0xff   :  { %vm472_vm6 = vcmp.ge.f32.partialorder %v454_v4, 1.0  ;;  %v420_v7 = vadd.f32 %v419_v6, %v236_v5 }
 0x100   :  { %v1042_v8 = vpop.f32.mrf.mxu0  ;;  %vm939_vm7 = vmpackc.low %vm472_vm6, %vm471_vm5  ;;  %v1080_v9 = vpop.f32.mrf.mxu1 }
 0x101   :  { %1103 = vmatmul.mubr.msk.bf16.vlgmr.msra.gmra.mxu1 %vm939_vm7, %v1163_v30  ;;  %v455_v12 = vadd.f32 %v1405_v13, %v420_v7 }
 0x102   :  { %v239_v10 = vpop.f32.mrf.mxu0  ;;  %v422_v11 = vpop.f32.mrf.mxu1  ;;  %1106 = vmatprep.mubr.msk.bf16.mxu1 %vm1162_vm0, %v1161_v0 }
 0x103   :  { %v423_v14 = vadd.f32 %v422_v11, %v239_v10  ;;  %vm473_vm8 = vcmp.ge.f32.partialorder %v455_v12, 1.0 }
 0x104   :  { %v1043_v15 = vpop.f32.mrf.mxu0  ;;  %v1081_v16 = vpop.f32.mrf.mxu1 }
 0x105   :  { %v456_v17 = vadd.f32 %v1405_v13, %v423_v14 }
 0x106   :  { %v244_v18 = vpop.f32.mrf.mxu0  ;;  %v427_v19 = vpop.f32.mrf.mxu1 }
 0x107   :  { %vm474_vm9 = vcmp.ge.f32.partialorder %v456_v17, 1.0  ;;  %v428_v20 = vadd.f32 %v427_v19, %v244_v18 }
 0x108   :  { %v1046_v21 = vpop.f32.mrf.mxu0  ;;  %v1084_v22 = vpop.f32.mrf.mxu1  ;;  %vm941_vm10 = vmpackc.low %vm474_vm9, %vm473_vm8 }
 0x109   :  { %1107 = vmatmul.mubr.msk.bf16.gmra.mxu1 %vm941_vm10, %v1163_v30  ;;  %v457_v25 = vadd.f32 %v1405_v13, %v428_v20 }
 0x10a   :  { %v247_v23 = vpop.f32.mrf.mxu0  ;;  %v430_v24 = vpop.f32.mrf.mxu1  ;;  %1110 = vmatprep.mubr.msk.bf16.mxu1 %vm1162_vm0, %v1161_v0 }
 0x10b   :  { %v431_v26 = vadd.f32 %v430_v24, %v247_v23  ;;  %vm475_vm11 = vcmp.ge.f32.partialorder %v457_v25, 1.0 }
 0x10c   :  { %v1047_v27 = vpop.f32.mrf.mxu0  ;;  %v1085_v28 = vpop.f32.mrf.mxu1 }
 0x10d   :  { %v458_v29 = vadd.f32 %v1405_v13, %v431_v26 }
 0x10f   :  { %vm476_vm12 = vcmp.ge.f32.partialorder %v458_v29, 1.0 }
 0x110   :  { %vm943_vm13 = vmpackc.low %vm476_vm12, %vm475_vm11 }
 0x111   :  { %1111 = vmatmul.mubr.msk.bf16.gmra.mxu1 %vm943_vm13, %v1163_v30 }
 0x1aa   :  { %v981_v31 = vpop.f32.mrf.mxu0 }
 0x1ac   :  { %v982_v32 = vpop.f32.mrf.mxu0 }
 0x1ad   :  { %v983_v0 = vadd.f32 %v982_v32, %v981_v31 }
 0x1ae   :  { %v984_v33 = vpop.f32.mrf.mxu0 }
 0x1af   :  { %v756_v13 = vadd.f32 %v983_v0, %v902_v39 }
 0x1b0   :  { %v985_v34 = vpop.f32.mrf.mxu0 }
 0x1b1   :  { %v986_v40 = vadd.f32 %v985_v34, %v984_v33 }
 0x1b2   :  { %v987_v35 = vpop.f32.mrf.mxu0 }
 0x1b3   :  { %v759_v45 = vadd.f32 %v986_v40, %v902_v39 }
 0x1b4   :  { %v988_v36 = vpop.f32.mrf.mxu0 }
 0x1b5   :  { %v989_v30 = vadd.f32 %v988_v36, %v987_v35 }
 0x1b6   :  { %v990_v37 = vpop.f32.mrf.mxu0 }
 0x1b7   :  { %v764_v51 = vadd.f32 %v989_v30, %v902_v39 }
 0x1b8   :  { %v991_v38 = vpop.f32.mrf.mxu0 }
 0x1b9   :  { %v992_v50 = vadd.f32 %v991_v38, %v990_v37 }
 0x1ba   :  { %v993_v41 = vpop.f32.mrf.mxu0 }
 0x1bb   :  { %v767_v57 = vadd.f32 %v992_v50, %v902_v39 }
 0x1bc   :  { %v994_v46 = vpop.f32.mrf.mxu0 }
 0x1bd   :  { %v995_v56 = vadd.f32 %v994_v46, %v993_v41 }
 0x1be   :  { %v996_v52 = vpop.f32.mrf.mxu0 }
 0x1bf   :  { %v772_v63 = vadd.f32 %v995_v56, %v902_v39 }
 0x1c0   :  { %v997_v58 = vpop.f32.mrf.mxu0 }
 0x1c1   :  { %v812_v42 = vpop.f32.mrf.mxu1  ;;  %v998_v62 = vadd.f32 %v997_v58, %v996_v52 }
 0x1c2   :  { %v813_v43 = vadd.f32 %v812_v42, %v756_v13 }
 0x1c3   :  { %v1104_v44 = vpop.f32.mrf.mxu1  ;;  %v775_v4 = vadd.f32 %v998_v62, %v902_v39 }
 0x1c4   :  { %835 = vst [vmem:[%s1466_s7] sm:$0xff] %v813_v43 }
 0x1c5   :  { %v815_v47 = vpop.f32.mrf.mxu1 }
 0x1c6   :  { %v816_v48 = vadd.f32 %v815_v47, %v759_v45 }
 0x1c7   :  { %v1105_v49 = vpop.f32.mrf.mxu1 }
 0x1c8   :  { %836 = vst [vmem:[%s1466_s7 + $0x8] sm:$0xff] %v816_v48 }
 0x1c9   :  { %v820_v53 = vpop.f32.mrf.mxu1 }
 0x1ca   :  { %v821_v54 = vadd.f32 %v820_v53, %v764_v51 }
 0x1cb   :  { %v1108_v55 = vpop.f32.mrf.mxu1 }
 0x1cc   :  { %837 = vst [vmem:[%s1466_s7 + $0x10] sm:$0xff] %v821_v54 }
 0x1cd   :  { %v823_v59 = vpop.f32.mrf.mxu1 }
 0x1ce   :  { %v824_v60 = vadd.f32 %v823_v59, %v767_v57 }
 0x1cf   :  { %v1109_v61 = vpop.f32.mrf.mxu1 }
 0x1d0   :  { %838 = vst [vmem:[%s1466_s7 + $0x18] sm:$0xff] %v824_v60 }
 0x1d1   :  { %v828_v1 = vpop.f32.mrf.mxu1 }
 0x1d2   :  { %v829_v2 = vadd.f32 %v828_v1, %v772_v63 }
 0x1d3   :  { %v1112_v3 = vpop.f32.mrf.mxu1 }
 0x1d4   :  { %839 = vst [vmem:[%s1466_s7 + $0x20] sm:$0xff] %v829_v2 }
 0x1d5   :  { %v831_v5 = vpop.f32.mrf.mxu1 }
 0x1d6   :  { %v832_v6 = vadd.f32 %v831_v5, %v775_v4 }
 0x1d7   :  { %v1113_v7 = vpop.f32.mrf.mxu1 }
 0x1d8   :  { %840 = vst [vmem:[%s1466_s7 + $0x28] sm:$0xff] %v832_v6 }

</bundles_post_ra>
